<compile_context>
chip_gen: v6e
topology: v6e:2x2x1
jax: 0.10.0
libtpu: 0.0.40
codegen_flags: <defaults>
</compile_context>

<pallas_src>
import math
import numpy as np

import jax
import jax.numpy as jnp
from jax.experimental import pallas as pl
from jax.experimental.pallas import tpu as pltpu

# ----------------------------- hyper-parameters ------------------------------
B = 2          # batch (number of skeletons)
N = 8          # num_joint (sequence length)
TC = 16        # token_channels (attention dim)
EC = 32        # embed_channels (transformer mlp_dim / output dim)
HEADS = 2      # Transformer heads
DH = TC // HEADS
LN_EPS = 1e-5  # PyTorch nn.LayerNorm default eps
SCALE = TC ** (-0.5)           # PyTorch Attention: self.scale = dim ** -0.5 (full dim)

# Row-tiled grid over the batch: each grid step processes SEQ_PER_BLK whole
# sequences, so attention never mixes rows across a block boundary.
SEQ_PER_BLK = 1
assert B % SEQ_PER_BLK == 0
RPB = SEQ_PER_BLK * N          # rows per block (8)
GRID = B // SEQ_PER_BLK        # grid steps (2) — sharded across TCs on v7x

XIN = 8                        # skel lane-padded 3 -> 8 input lanes
FUSE = 2 * TC + HEADS * EC     # fused projection width: [q | k | v@Wo per head] = 96

# ---------------- dense packed parameter buffer layout (f32) -----------------
# One (64, 128) f32 buffer = 32 KiB (payload ~19 KiB). Weights packed side-by-side
# along rows AND lanes; all reads below are static slices at point of use.
PACK_ROWS, PACK_COLS = 64, 128
W_FUSED_R, W_FUSED_C = 0, 0        # (XIN, FUSE)    rows 0:8,   lanes 0:96 (rows 3:8 zero)
MLP_W2_R, MLP_W2_C = 0, 96         # (2*EC, EC)     rows 0:64,  lanes 96:128
MLP_W1_R, MLP_W1_C = 8, 0          # (EC, 2*EC)     rows 8:40,  lanes 0:64
B_FUSED_R = 40                     # (1, FUSE)      row 40,     lanes 0:96
ATT_B_R, ATT_B_C = 41, 0           # (1, EC)
LN_G_R, LN_G_C = 41, EC            # (1, EC)
LN_B_R, LN_B_C = 41, 2 * EC        # (1, EC)
MLP_B1_R, MLP_B1_C = 42, 0         # (1, 2*EC)
MLP_B2_R, MLP_B2_C = 42, 2 * EC    # (1, EC)

# Logical (unfused) parameter shapes — used only for init and the pure-JAX reference.
PARAM_SPECS = [
    ("tok_w", (3, TC)),           ("tok_b", (1, TC)),
    ("qkv_w", (TC, 3 * TC)),      ("qkv_b", (1, 3 * TC)),
    ("out_w", (TC, EC)),          ("out_b", (1, EC)),
    ("ln_g", (1, EC)),            ("ln_b", (1, EC)),
    ("mlp_w1", (EC, 2 * EC)),     ("mlp_b1", (1, 2 * EC)),
    ("mlp_w2", (2 * EC, EC)),     ("mlp_b2", (1, EC)),
]


# ------------------------------- the kernel ----------------------------------
def sekl_encoder_kernel(x_ref, p_ref, o_ref):
    x = x_ref[...]                                                   # (RPB, XIN)

    # Fused token+qkv projection (token linear, attention scale and the
    # per-head output projection of V all folded into the weights host-side).
    w_fused = p_ref[W_FUSED_R:W_FUSED_R + XIN, W_FUSED_C:W_FUSED_C + FUSE]
    b_fused = p_ref[B_FUSED_R:B_FUSED_R + 1, 0:FUSE]
    qkv = jnp.dot(x, w_fused, preferred_element_type=jnp.float32) + b_fused

    # Attention accumulator seeded with out_b + (v_bias @ out_w) (host-folded).
    att = p_ref[ATT_B_R:ATT_B_R + 1, ATT_B_C:ATT_B_C + EC]          # (1, EC)

    if SEQ_PER_BLK > 1:
        rb = jax.lax.broadcasted_iota(jnp.int32, (RPB, RPB), 0) // N
        cb = jax.lax.broadcasted_iota(jnp.int32, (RPB, RPB), 1) // N
        blk_mask = (rb == cb).astype(jnp.float32)

    for h in range(HEADS):                                           # static unroll
        q = qkv[:, h * DH:(h + 1) * DH]                              # (RPB, DH), pre-scaled
        k = qkv[:, TC + h * DH:TC + (h + 1) * DH]                    # (RPB, DH)
        vp = qkv[:, 2 * TC + h * EC:2 * TC + (h + 1) * EC]           # (RPB, EC) = v @ W_o[h]
        dots = jax.lax.dot_general(q, k, (((1,), (1,)), ((), ())),
                                   preferred_element_type=jnp.float32)
        dots = dots - jnp.max(dots, axis=-1, keepdims=True)
        e = jnp.exp(dots)
        if SEQ_PER_BLK > 1:
            e = e * blk_mask               # zero cross-sequence terms after exp
        p = e * pl.reciprocal(jnp.sum(e, axis=-1, keepdims=True), approx=True)
        att = att + jnp.dot(p, vp, preferred_element_type=jnp.float32)

    # Residual(LayerNormalize(MLP_Block)):  att + MLP(LN(att))
    mu = jnp.mean(att, axis=-1, keepdims=True)
    var = jnp.mean((att - mu) ** 2, axis=-1, keepdims=True)
    ln_g = p_ref[LN_G_R:LN_G_R + 1, LN_G_C:LN_G_C + EC]
    ln_b = p_ref[LN_B_R:LN_B_R + 1, LN_B_C:LN_B_C + EC]
    y = (att - mu) * jax.lax.rsqrt(var + LN_EPS) * ln_g + ln_b

    w1 = p_ref[MLP_W1_R:MLP_W1_R + EC, MLP_W1_C:MLP_W1_C + 2 * EC]
    b1 = p_ref[MLP_B1_R:MLP_B1_R + 1, MLP_B1_C:MLP_B1_C + 2 * EC]
    y = jnp.maximum(jnp.dot(y, w1, preferred_element_type=jnp.float32) + b1, 0.0)

    w2 = p_ref[MLP_W2_R:MLP_W2_R + 2 * EC, MLP_W2_C:MLP_W2_C + EC]
    b2 = p_ref[MLP_B2_R:MLP_B2_R + 1, MLP_B2_C:MLP_B2_C + EC]
    y = jnp.dot(y, w2, preferred_element_type=jnp.float32) + b2

    o_ref[...] = att + y
    # TODO(synk): Dropout layers (attention do1, MLP do1/do2) are eval-mode identities;
    # training-mode stochastic dropout is not implemented.


# -------------------------------- wrapper ------------------------------------
@jax.jit
def sekl_encoder(skel, packed_params):
    x = skel.reshape(B * N, 3)
    x = jnp.pad(x, ((0, 0), (0, XIN - 3)))       # lane-pad the tiny input slab
    out = pl.pallas_call(
        sekl_encoder_kernel,
        out_shape=jax.ShapeDtypeStruct((B * N, EC), jnp.float32),
        grid_spec=pltpu.PrefetchScalarGridSpec(
            num_scalar_prefetch=0,
            grid=(GRID,),
            in_specs=[
                pl.BlockSpec((RPB, XIN), lambda i: (i, 0)),
                # Constant index_map: packed weights DMA'd once, stay resident.
                pl.BlockSpec((PACK_ROWS, PACK_COLS), lambda i: (0, 0)),
            ],
            out_specs=pl.BlockSpec((RPB, EC), lambda i: (i, 0)),
        ),
        compiler_params=pltpu.CompilerParams(
            dimension_semantics=("parallel",)),   # both TCs on v7x; harmless on v5e/v6e
    )(x, packed_params)
    return out.reshape(B, N, EC)


# ----------------------- deterministic parameter init ------------------------
def init_params(key):
    P = {}
    for name, shape in PARAM_SPECS:
        if name == "ln_g":
            P[name] = jnp.ones(shape, jnp.float32)          # LayerNorm weight
        elif shape[0] == 1:                                  # biases / LN beta
            key, sub = jax.random.split(key)
            P[name] = 0.1 * jax.random.normal(sub, shape, jnp.float32)
        else:                                                # weights
            key, sub = jax.random.split(key)
            fan_in, fan_out = shape
            scale = math.sqrt(2.0 / (fan_in + fan_out))      # xavier-ish
            P[name] = scale * jax.random.normal(sub, shape, jnp.float32)
    return P


def pack_params(P):
    """Host-side algebraic folds + dense packing into one (64, 128) f32 buffer."""
    tok_w = np.asarray(P["tok_w"]); tok_b = np.asarray(P["tok_b"])
    qkv_w = np.asarray(P["qkv_w"]); qkv_b = np.asarray(P["qkv_b"])
    out_w = np.asarray(P["out_w"]); out_b = np.asarray(P["out_b"])

    # Fold token linear into qkv:  qkv(x) = x @ Wtq + btq
    Wtq = tok_w @ qkv_w                              # (3, 3*TC)
    btq = tok_b @ qkv_w + qkv_b                      # (1, 3*TC)
    Wq, Wk, Wv = Wtq[:, :TC], Wtq[:, TC:2 * TC], Wtq[:, 2 * TC:]
    bq, bk, bv = btq[:, :TC], btq[:, TC:2 * TC], btq[:, 2 * TC:]

    # Fold attention scale into the Q columns.
    Wq = Wq * SCALE
    bq = bq * SCALE

    # Fold the output projection into the V columns (per head); the V-bias
    # contribution goes into the attention-bias seed (softmax rows sum to 1).
    Wvo = np.concatenate(
        [Wv[:, h * DH:(h + 1) * DH] @ out_w[h * DH:(h + 1) * DH] for h in range(HEADS)],
        axis=1)                                      # (3, HEADS*EC)
    att_b = out_b + bv @ out_w                       # (1, EC)

    W_fused = np.concatenate([Wq, Wk, Wvo], axis=1).astype(np.float32)          # (3, FUSE)
    b_fused = np.concatenate([bq, bk, np.zeros((1, HEADS * EC))], axis=1).astype(np.float32)

    buf = np.zeros((PACK_ROWS, PACK_COLS), np.float32)
    buf[W_FUSED_R:W_FUSED_R + 3, W_FUSED_C:W_FUSED_C + FUSE] = W_fused   # rows 3:8 stay 0
    buf[MLP_W2_R:MLP_W2_R + 2 * EC, MLP_W2_C:MLP_W2_C + EC] = np.asarray(P["mlp_w2"])
    buf[MLP_W1_R:MLP_W1_R + EC, MLP_W1_C:MLP_W1_C + 2 * EC] = np.asarray(P["mlp_w1"])
    buf[B_FUSED_R, 0:FUSE] = b_fused[0]
    buf[ATT_B_R, ATT_B_C:ATT_B_C + EC] = np.asarray(att_b)[0]
    buf[LN_G_R, LN_G_C:LN_G_C + EC] = np.asarray(P["ln_g"])[0]
    buf[LN_B_R, LN_B_C:LN_B_C + EC] = np.asarray(P["ln_b"])[0]
    buf[MLP_B1_R, MLP_B1_C:MLP_B1_C + 2 * EC] = np.asarray(P["mlp_b1"])[0]
    buf[MLP_B2_R, MLP_B2_C:MLP_B2_C + EC] = np.asarray(P["mlp_b2"])[0]
    return jnp.asarray(buf)


# ------------------------- pure-JAX reference ---------------------------------
def ref_forward(skel, P):
    b, n, _ = skel.shape
    tok = skel @ P["tok_w"] + P["tok_b"]
    qkv = tok @ P["qkv_w"] + P["qkv_b"]
    qkv = qkv.reshape(b, n, 3, HEADS, DH).transpose(2, 0, 3, 1, 4)
    q, k, v = qkv[0], qkv[1], qkv[2]
    dots = jnp.einsum("bhid,bhjd->bhij", q, k) * SCALE
    attn = jax.nn.softmax(dots, axis=-1)
    out = jnp.einsum("bhij,bhjd->bhid", attn, v)
    out = out.transpose(0, 2, 1, 3).reshape(b, n, TC)
    att = out @ P["out_w"] + P["out_b"]
    mu = att.mean(-1, keepdims=True)
    var = ((att - mu) ** 2).mean(-1, keepdims=True)
    y = (att - mu) / jnp.sqrt(var + LN_EPS) * P["ln_g"] + P["ln_b"]
    y = jax.nn.relu(y @ P["mlp_w1"] + P["mlp_b1"])
    y = y @ P["mlp_w2"] + P["mlp_b2"]
    return att + y


# ---------------------------------- main --------------------------------------
if __name__ == "__main__":
    key = jax.random.PRNGKey(0)
    kx, kparam = jax.random.split(key)
    skel = jax.random.normal(kx, (B, N, 3), jnp.float32)
    params = init_params(kparam)
    packed = pack_params(params)

    out = sekl_encoder(skel, packed)
    out = jax.block_until_ready(out)
    assert out.shape == (B, N, EC), out.shape

    ref = ref_forward(skel, params)
    # Tolerance covers (a) the EUP approx reciprocal in the softmax (and the
    # V-bias fold through it), and (b) default-precision matmuls in the XLA
    # reference vs MXU dots in the kernel.
    np.testing.assert_allclose(np.asarray(out), np.asarray(ref), rtol=2e-2, atol=2e-2)

    print("KERNEL_OK")
</pallas_src>

<mosaic_0001>
module attributes {stable_mosaic.version = 11 : i64} {
  func.func @sekl_encoder_kernel(%arg0: i32, %arg1: memref<8x8xf32, #tpu.memory_space<vmem>>, %arg2: memref<64x128xf32, #tpu.memory_space<vmem>>, %arg3: memref<8x32xf32, #tpu.memory_space<vmem>>) attributes {dimension_semantics = [#tpu.dimension_semantics<parallel>], iteration_bounds = array<i64: 2>, scalar_prefetch = 0 : i64, scratch_operands = 0 : i64, tpu.core_type = #tpu.core_type<tc>, window_params = [{transform_indices = @transform_0, window_bounds = array<i64: 8, 8>}, {pipeline_mode = #tpu.pipeline_mode<synchronous>, transform_indices = @transform_1, window_bounds = array<i64: 64, 128>}, {transform_indices = @transform_2, window_bounds = array<i64: 8, 32>}]} {
    %c0 = arith.constant 0 : index
    %c0_0 = arith.constant 0 : index
    %0 = vector.load %arg1[%c0, %c0_0] : memref<8x8xf32, #tpu.memory_space<vmem>>, vector<8x8xf32>
    %c0_1 = arith.constant 0 : index
    %c0_2 = arith.constant 0 : index
    %1 = vector.load %arg2[%c0_1, %c0_2] : memref<64x128xf32, #tpu.memory_space<vmem>>, vector<8x96xf32>
    %c40 = arith.constant 40 : index
    %c0_3 = arith.constant 0 : index
    %2 = vector.load %arg2[%c40, %c0_3] : memref<64x128xf32, #tpu.memory_space<vmem>>, vector<1x96xf32>
    %cst = arith.constant dense<0.000000e+00> : vector<8x96xf32>
    %3 = tpu.matmul %0, %1, %cst {dimension_numbers = #tpu.dot_dimension_numbers<[1], [0], [0], [1], [0, 0, 1, 1], [], []>} : vector<8x8xf32>, vector<8x96xf32>, vector<8x96xf32> -> vector<8x96xf32>
    %4 = vector.broadcast %2 : vector<1x96xf32> to vector<8x96xf32>
    %5 = arith.addf %3, %4 : vector<8x96xf32>
    %c41 = arith.constant 41 : index
    %c0_4 = arith.constant 0 : index
    %6 = vector.load %arg2[%c41, %c0_4] : memref<64x128xf32, #tpu.memory_space<vmem>>, vector<1x32xf32>
    %7 = vector.extract_strided_slice %5 {offsets = [0, 0], sizes = [8, 8], strides = [1, 1]} : vector<8x96xf32> to vector<8x8xf32>
    %8 = vector.extract_strided_slice %5 {offsets = [0, 16], sizes = [8, 8], strides = [1, 1]} : vector<8x96xf32> to vector<8x8xf32>
    %9 = vector.extract_strided_slice %5 {offsets = [0, 32], sizes = [8, 32], strides = [1, 1]} : vector<8x96xf32> to vector<8x32xf32>
    %cst_5 = arith.constant dense<0.000000e+00> : vector<8x8xf32>
    %10 = tpu.matmul %7, %8, %cst_5 {dimension_numbers = #tpu.dot_dimension_numbers<[1], [1], [0], [0], [0, 0, 1, 0], [], []>} : vector<8x8xf32>, vector<8x8xf32>, vector<8x8xf32> -> vector<8x8xf32>
    %cst_6 = arith.constant dense<0xFF800000> : vector<8xf32>
    %11 = vector.multi_reduction <maximumf>, %10, %cst_6 [1] : vector<8x8xf32> to vector<8xf32>
    %12 = vector.shape_cast %11 : vector<8xf32> to vector<8x1xf32>
    %13 = vector.broadcast %12 : vector<8x1xf32> to vector<8x8xf32>
    %14 = arith.subf %10, %13 : vector<8x8xf32>
    %15 = math.exp %14 : vector<8x8xf32>
    %cst_7 = arith.constant dense<0.000000e+00> : vector<8xf32>
    %16 = vector.multi_reduction <add>, %15, %cst_7 [1] : vector<8x8xf32> to vector<8xf32>
    %17 = vector.shape_cast %16 : vector<8xf32> to vector<8x1xf32>
    %18 = tpu.reciprocal %17 {approx = true} : vector<8x1xf32> -> vector<8x1xf32>
    %19 = vector.broadcast %18 : vector<8x1xf32> to vector<8x8xf32>
    %20 = arith.mulf %15, %19 : vector<8x8xf32>
    %cst_8 = arith.constant dense<0.000000e+00> : vector<8x32xf32>
    %21 = tpu.matmul %20, %9, %cst_8 {dimension_numbers = #tpu.dot_dimension_numbers<[1], [0], [0], [1], [0, 0, 1, 1], [], []>} : vector<8x8xf32>, vector<8x32xf32>, vector<8x32xf32> -> vector<8x32xf32>
    %22 = vector.broadcast %6 : vector<1x32xf32> to vector<8x32xf32>
    %23 = arith.addf %22, %21 : vector<8x32xf32>
    %24 = vector.extract_strided_slice %5 {offsets = [0, 8], sizes = [8, 8], strides = [1, 1]} : vector<8x96xf32> to vector<8x8xf32>
    %25 = vector.extract_strided_slice %5 {offsets = [0, 24], sizes = [8, 8], strides = [1, 1]} : vector<8x96xf32> to vector<8x8xf32>
    %26 = vector.extract_strided_slice %5 {offsets = [0, 64], sizes = [8, 32], strides = [1, 1]} : vector<8x96xf32> to vector<8x32xf32>
    %cst_9 = arith.constant dense<0.000000e+00> : vector<8x8xf32>
    %27 = tpu.matmul %24, %25, %cst_9 {dimension_numbers = #tpu.dot_dimension_numbers<[1], [1], [0], [0], [0, 0, 1, 0], [], []>} : vector<8x8xf32>, vector<8x8xf32>, vector<8x8xf32> -> vector<8x8xf32>
    %cst_10 = arith.constant dense<0xFF800000> : vector<8xf32>
    %28 = vector.multi_reduction <maximumf>, %27, %cst_10 [1] : vector<8x8xf32> to vector<8xf32>
    %29 = vector.shape_cast %28 : vector<8xf32> to vector<8x1xf32>
    %30 = vector.broadcast %29 : vector<8x1xf32> to vector<8x8xf32>
    %31 = arith.subf %27, %30 : vector<8x8xf32>
    %32 = math.exp %31 : vector<8x8xf32>
    %cst_11 = arith.constant dense<0.000000e+00> : vector<8xf32>
    %33 = vector.multi_reduction <add>, %32, %cst_11 [1] : vector<8x8xf32> to vector<8xf32>
    %34 = vector.shape_cast %33 : vector<8xf32> to vector<8x1xf32>
    %35 = tpu.reciprocal %34 {approx = true} : vector<8x1xf32> -> vector<8x1xf32>
    %36 = vector.broadcast %35 : vector<8x1xf32> to vector<8x8xf32>
    %37 = arith.mulf %32, %36 : vector<8x8xf32>
    %cst_12 = arith.constant dense<0.000000e+00> : vector<8x32xf32>
    %38 = tpu.matmul %37, %26, %cst_12 {dimension_numbers = #tpu.dot_dimension_numbers<[1], [0], [0], [1], [0, 0, 1, 1], [], []>} : vector<8x8xf32>, vector<8x32xf32>, vector<8x32xf32> -> vector<8x32xf32>
    %39 = arith.addf %23, %38 : vector<8x32xf32>
    %cst_13 = arith.constant dense<0.000000e+00> : vector<8xf32>
    %40 = vector.multi_reduction <add>, %39, %cst_13 [1] : vector<8x32xf32> to vector<8xf32>
    %41 = vector.shape_cast %40 : vector<8xf32> to vector<8x1xf32>
    %cst_14 = arith.constant 3.200000e+01 : f32
    %42 = vector.broadcast %cst_14 : f32 to vector<8x1xf32>
    %43 = arith.divf %41, %42 : vector<8x1xf32>
    %44 = vector.broadcast %43 : vector<8x1xf32> to vector<8x32xf32>
    %45 = arith.subf %39, %44 : vector<8x32xf32>
    %46 = arith.mulf %45, %45 : vector<8x32xf32>
    %cst_15 = arith.constant dense<0.000000e+00> : vector<8xf32>
    %47 = vector.multi_reduction <add>, %46, %cst_15 [1] : vector<8x32xf32> to vector<8xf32>
    %48 = vector.shape_cast %47 : vector<8xf32> to vector<8x1xf32>
    %cst_16 = arith.constant 3.200000e+01 : f32
    %49 = vector.broadcast %cst_16 : f32 to vector<8x1xf32>
    %50 = arith.divf %48, %49 : vector<8x1xf32>
    %c41_17 = arith.constant 41 : index
    %c32 = arith.constant 32 : index
    %51 = vector.load %arg2[%c41_17, %c32] : memref<64x128xf32, #tpu.memory_space<vmem>>, vector<1x32xf32>
    %c41_18 = arith.constant 41 : index
    %c64 = arith.constant 64 : index
    %52 = vector.load %arg2[%c41_18, %c64] : memref<64x128xf32, #tpu.memory_space<vmem>>, vector<1x32xf32>
    %53 = vector.broadcast %43 : vector<8x1xf32> to vector<8x32xf32>
    %54 = arith.subf %39, %53 : vector<8x32xf32>
    %cst_19 = arith.constant 9.99999974E-6 : f32
    %55 = vector.broadcast %cst_19 : f32 to vector<8x1xf32>
    %56 = arith.addf %50, %55 : vector<8x1xf32>
    %57 = math.rsqrt %56 : vector<8x1xf32>
    %58 = vector.broadcast %57 : vector<8x1xf32> to vector<8x32xf32>
    %59 = arith.mulf %54, %58 : vector<8x32xf32>
    %60 = vector.broadcast %51 : vector<1x32xf32> to vector<8x32xf32>
    %61 = arith.mulf %59, %60 : vector<8x32xf32>
    %62 = vector.broadcast %52 : vector<1x32xf32> to vector<8x32xf32>
    %63 = arith.addf %61, %62 : vector<8x32xf32>
    %c8 = arith.constant 8 : index
    %c0_20 = arith.constant 0 : index
    %64 = vector.load %arg2[%c8, %c0_20] : memref<64x128xf32, #tpu.memory_space<vmem>>, vector<32x64xf32>
    %c42 = arith.constant 42 : index
    %c0_21 = arith.constant 0 : index
    %65 = vector.load %arg2[%c42, %c0_21] : memref<64x128xf32, #tpu.memory_space<vmem>>, vector<1x64xf32>
    %cst_22 = arith.constant dense<0.000000e+00> : vector<8x64xf32>
    %66 = tpu.matmul %63, %64, %cst_22 {dimension_numbers = #tpu.dot_dimension_numbers<[1], [0], [0], [1], [0, 0, 1, 1], [], []>} : vector<8x32xf32>, vector<32x64xf32>, vector<8x64xf32> -> vector<8x64xf32>
    %67 = vector.broadcast %65 : vector<1x64xf32> to vector<8x64xf32>
    %68 = arith.addf %66, %67 : vector<8x64xf32>
    %cst_23 = arith.constant 0.000000e+00 : f32
    %69 = vector.broadcast %cst_23 : f32 to vector<8x64xf32>
    %70 = arith.maximumf %68, %69 : vector<8x64xf32>
    %c0_24 = arith.constant 0 : index
    %c96 = arith.constant 96 : index
    %71 = vector.load %arg2[%c0_24, %c96] : memref<64x128xf32, #tpu.memory_space<vmem>>, vector<64x32xf32>
    %c42_25 = arith.constant 42 : index
    %c64_26 = arith.constant 64 : index
    %72 = vector.load %arg2[%c42_25, %c64_26] : memref<64x128xf32, #tpu.memory_space<vmem>>, vector<1x32xf32>
    %cst_27 = arith.constant dense<0.000000e+00> : vector<8x32xf32>
    %73 = tpu.matmul %70, %71, %cst_27 {dimension_numbers = #tpu.dot_dimension_numbers<[1], [0], [0], [1], [0, 0, 1, 1], [], []>} : vector<8x64xf32>, vector<64x32xf32>, vector<8x32xf32> -> vector<8x32xf32>
    %74 = vector.broadcast %72 : vector<1x32xf32> to vector<8x32xf32>
    %75 = arith.addf %73, %74 : vector<8x32xf32>
    %76 = arith.addf %39, %75 : vector<8x32xf32>
    %c0_28 = arith.constant 0 : index
    %c0_29 = arith.constant 0 : index
    %77 = vector.load %arg3[%c0_28, %c0_29] : memref<8x32xf32, #tpu.memory_space<vmem>>, vector<8x32xf32>
    tpu.vector_store %arg3[%c0_28, %c0_29], %76 {strides = array<i32>} : memref<8x32xf32, #tpu.memory_space<vmem>>, vector<8x32xf32>,
    return
  }
  func.func @transform_0(%arg0: i32) -> (i32, i32) {
    %c0_i32 = arith.constant 0 : i32
    %c0_i32_0 = arith.constant 0 : i32
    return %arg0, %c0_i32 : i32, i32
  }
  func.func @transform_1(%arg0: i32) -> (i32, i32) {
    %c0_i32 = arith.constant 0 : i32
    %c0_i32_0 = arith.constant 0 : i32
    %c0_i32_1 = arith.constant 0 : i32
    return %c0_i32, %c0_i32_0 : i32, i32
  }
  func.func @transform_2(%arg0: i32) -> (i32, i32) {
    %c0_i32 = arith.constant 0 : i32
    %c0_i32_0 = arith.constant 0 : i32
    return %arg0, %c0_i32 : i32, i32
  }
}

</mosaic_0001>

<bundles_post_ra>
// kernel: sekl_encoder.1
= control target key start
LH: loop header
LB: loop body
LE: loop exit
PB: predicated region body
PF: predicated region fallthrough
CT: control target
= control target key end

     0   :  { %7 = vsyncpa [#allocation3], 0  ;;  %s1340_s0 = inlined_call_operand.vmem [shape: f32[16,8], index: 0, kind: input, shape index: {}]   ;;  %s1341_s1 = inlined_call_operand.hbm [shape: f32[64,128], index: 1, kind: input, shape index: {}]   ;;  %s1342_s2 = inlined_call_operand.hbm [shape: f32[16,32], index: 2, kind: output, shape index: {}]  }
   0x1   :  { %8 = vsyncpa [#allocation4], 0 }
   0x2   :  { %10 = vsyncpa [#allocation4 + $0x1], 0  ;;  %s1175_s9 = smov 0   ;;  %s1177_s10 = smov 0  }
   0x3   :  { %s1179_s11 = smov 0   ;;  %s1181_s12 = smov 0  }
   0x4 LB: > { %s1196_s13 = sadd.s32 4294967295, %s1146_s12   ;;  %s883_s14 = sadd.s32 4294967294, %s1146_s12   ;;  %s1146_s12 = sphi %s1181_s12, %s1350_s12   ;;  %s1142_s11 = sphi %s1179_s11, %s1349_s11   ;;  %s1138_s10 = sphi %s1177_s10, %s1348_s10   ;;  %s1134_s9 = sphi %s1175_s9, %s1347_s9  }
   0x5   : > { %s1200_s15 = sadd.s32 1, %s1146_s12   ;;  %s70_s16 = sadd.s32 1, %s1142_s11 }
   0x6   : > { %s67_s17 = ssub.s32 %s1146_s12, %s1200_s15  ;;  %p80_p0 = scmp.ne.s32.totalorder %s1142_s11, %s1138_s10 }
   0x7   : > { %p68_p1 = scmp.eq.s32.totalorder %s67_s17, 0  ;;  %p81_p2 = scmp.eq.s32.totalorder %s1196_s13, 1 }
   0x8   : > { %p86_p3 = scmp.ne.s32.totalorder %s1138_s10, %s1134_s9  ;;  %p87_p4 = scmp.eq.s32.totalorder %s883_s14, 1 }
   0x9   : > { %s1211_s18 = scalar_select %p68_p1, %s1142_s11, %s70_s16  }
   0xa   : > { %p1213_p5 = por %p81_p2, %p80_p0  ;;  %p1217_p6 = por %p87_p4, %p86_p3 }
   0xb   : > { %p884_p7 = scmp.ge.s32.totalorder %s1146_s12, 1  ;;  %p94_p8 = scmp.lt.s32.totalorder %s1146_s12, 3 }
   0xc   : > { %s1344_s20 = scalar_select %p1217_p6, 1, 0 }
   0xd   : > { %p1000_p9 = scmp.eq.s32.totalorder %s1196_s13, 0  ;;  %p1224_p10 = pnand %p884_p7, %p94_p8 }
   0xe   : > { %s1148_s22 = smov [#allocation2]  }
   0xf   : > { %s106_s23 = sshll.u32 %s1148_s22, 4  ;;  %p992_p11 = pneg %p1224_p10  ;;  %s107_s23 = int_to_ptr.vmem [resolvable:$true] %s106_s23 }
  0x10   : > { %s1067_s24 = scalar_lea.vmem %s107_s23, 1024  ;;  %p1075_p3 = scmp.lt.s32.totalorder %s107_s23, %s107_s23 }
  0x11   : > { %p993_p12 = pnand %p1000_p9, %p992_p11  ;;  %p1068_p0 = scmp.ne.s32.totalorder %s107_s23, %s1067_s24 }
  0x12   : > { %p1076_p4 = scmp.lt.s32.totalorder %s1067_s24, %s1067_s24 }
  0x13   : > { %p1058_p13 = pneg %p993_p12 }
  0x14   : > { %p1077_p6 = por %p1076_p4, %p1075_p3 }
  0x15   : > { %p1070_p1 = pnand %p1068_p0, %p1058_p13 }
  0x17   : > { %p1071_p2 = pneg %p1070_p1 }
  0x19   : > { %p1078_p7 = pnand %p1077_p6, %p1071_p2 }
  0x1b   : > { %1081 = shalt.err (!%p1078_p7)
}
  0x1c   : > { %s1149_s25 = smov 128   ;;  %s1150_s26 = smov 8  }
  0x1d   : > { %995 = dma.hbm_to_vmem [thread:$0]  (!%p993_p12), %s1341_s1, 1024, %s107_s23, [#allocation3], %s1149_s25, %s1149_s25, %s1150_s26  }
  0x1e   : > { %129 = sbr.rel (%p1224_p10) target bundleno = 1775 (0x6ef), region = 28 }
  0x23   : > { %1125 = dma.done.wait (%p1000_p9), [#allocation3], 1024  }
  0x24   : > { %1127 = vsyncadd (%p1000_p9), [#allocation3], 4294966272  ;;  %p150_p8 = scmp.lt.s32.totalorder %s1196_s13, 1  ;;  %v1151_v0 = vmov 0.0   ;;  %vm1152_vm0 = vmmov 0   ;;  %vm161_vm1 = vcmask 64512  }
  0x25   : > { %931 = vmatprep.subr.mxu1 %v1151_v0  ;;  %933 = vmatprep.mubr.msk.f32.mxu1 %vm1152_vm0, %v1151_v0  ;;  %v1252_v1 = vld [vmem:[#allocation2] sm:$0xff]  ;;  %v891_v3 = vld [vmem:[#allocation2 + $0x28] ss:$0 sm:$0xff]  ;;  %s1153_s6 = smov 120   ;;  %s1154_s7 = smov 112   ;;  %vm571_vm2 = vcmask 261120  }
  0x26   : > { %s151_s29 = scalar_select %p150_p8, %s1196_s13, 1  ;;  %941 = vmatprep.subr.mxu0 %v1151_v0  ;;  %943 = vmatprep.mubr.msk.f32.mxu0 %vm1152_vm0, %v1151_v0  ;;  %v896_v34 = vld [vmem:[#allocation2 + $0x29] ss:$0 sm:$0xff]  ;;  %v598_v47 = vld [vmem:[#allocation2 + $0x20] sm:$0xff]  ;;  %v597_v48 = vld [vmem:[#allocation2 + $0x18] sm:$0xff]  ;;  %vm722_vm3 = vcmask 523264  }
  0x27   : > { %932 = vmatpush3.msra.mxu1 %v1252_v1  ;;  %s1155_s8 = smov 104   ;;  %s1156_s14 = smov 64   ;;  %v596_v49 = vld [vmem:[#allocation2 + $0x10] sm:$0xff]  ;;  %v595_v50 = vld [vmem:[#allocation2 + $0x8] sm:$0xff]  ;;  %v685_v51 = vld [vmem:[#allocation2 + $0x38] sm:$0xff] }
  0x28   : > { %s890_s30 = sshll.u32 %s151_s29, 3  ;;  %936 = vmatprep.subr.mxu1 %v1151_v0  ;;  %s1157_s16 = smov 96   ;;  %v684_v52 = vld [vmem:[#allocation2 + $0x30] sm:$0xff]  ;;  %v683_v53 = vld [vmem:[#allocation2 + $0x28] sm:$0xff] }
  0x29   : > { %s153_s5 = scalar_lea.vmem %s1340_s0, %s890_s30  ;;  %s1158_s17 = smov 32   ;;  %v900_v54 = vld [vmem:[#allocation2 + $0x2a] ss:$0 sm:$0xff] }
  0x2a   : > { %v154_v2 = vld [vmem:[%s153_s5] sm:$0xff]  ;;  %s147_s21 = sand.u32 1, %s1138_s10   ;;  %s904_s23 = sshll.u32 %s1196_s13, 7 }
  0x2b   : > { %934 = vmatmul.mubr.msk.f32.vlgmr.msra.gmra.mxu1 %vm161_vm1, %v154_v2  ;;  %s889_s22 = sshll.u32 %s147_s21, 3  ;;  %s810_s28 = scalar_lea.hbm %s1342_s2, %s904_s23 }
  0x2c   : > { %938 = vmatprep.mubr.msk.f32.mxu1 %vm1152_vm0, %v1151_v0  ;;  %s149_s24 = scalar_lea.vmem [#allocation5], %s889_s22  ;;  %s799_s29 = scalar_lea.sflag [#allocation4], %s147_s21 }
  0x2d   : > { %s812_s25 = sshll.u32 %s149_s24, 4  ;;  %s1159_s13 = smov [#allocation5]   ;;  %s813_s25 = int_to_ptr.vmem [resolvable:$true] %s812_s25 }
  0x2e   : > { %s1082_s30 = scalar_lea.vmem %s813_s25, 128  ;;  %s1086_s3 = sshll.u32 %s1159_s13, 4  ;;  %s1087_s3 = int_to_ptr.vmem [resolvable:$false] %s1086_s3 }
  0x2f   : > { %p1083_p6 = scmp.ne.s32.totalorder %s813_s25, %s1082_s30  ;;  %s1088_s4 = scalar_lea.vmem %s1087_s3, 256 }
  0x30   : > { %p1089_p11 = scmp.lt.s32.totalorder %s813_s25, %s1087_s3  ;;  %p1090_p12 = scmp.lt.s32.totalorder %s1088_s4, %s1082_s30 }
  0x31   : > { %p1084_p9 = pnand %p1083_p6, %p1213_p5 }
  0x32   : > { %p1091_p13 = por %p1090_p12, %p1089_p11 }
  0x33   : > { %p1085_p10 = pneg %p1084_p9 }
  0x35   : > { %p1092_p0 = pnand %p1091_p13, %p1085_p10 }
  0xeb   : > { %v231_v4 = vpop.f32.mrf.mxu1 }
  0xec   : > { %v232_v5 = vadd.f32 %v891_v3, %v231_v4 }
  0xed   : > { %v935_v6 = vpop.f32.mrf.mxu1 }
  0xee   : > { %405 = vrot.lane.b32.xlu1 %v232_v5, %s1153_s6  ;;  %237 = vrot.lane.b32.xlu0 %v232_v5, %s1154_s7 }
  0xf2   : > { %407 = vrot.lane.b32.xlu0 %v232_v5, %s1155_s8 }
 0x160   : > { %v238_v7 = vpop.permute.xlu0 %237  ;;  %v406_v9 = vpop.permute.xlu1 %405 }
 0x161   : > { %937 = vmatpush3.xpose.msk.msra.mxu1 %vm161_vm1, %v238_v7 }
 0x162   : > { %946 = vmatprep.subr.mxu1 %v1151_v0 }
 0x164   : > { %939 = vmatmul.mubr.msk.f32.vlgmr.msra.gmra.mxu1 %vm161_vm1, %v232_v5  ;;  %v408_v8 = vpop.permute.xlu0 %407 }
 0x165   : > { %947 = vmatpush3.xpose.msk.msra.mxu1 %vm161_vm1, %v408_v8  ;;  %948 = vmatprep.mubr.msk.f32.mxu1 %vm1152_vm0, %v1151_v0 }
 0x166   : > { %956 = vmatprep.subr.mxu1 %v1151_v0 }
 0x168   : > { %949 = vmatmul.mubr.msk.f32.vlgmr.msra.gmra.mxu1 %vm161_vm1, %v406_v9 }
 0x169   : > { %964 = vmatprep.mubr.msk.f32.mxu1 %vm1152_vm0, %v1151_v0  ;;  %957 = vmatpush3.msra.mxu1 %v598_v47 }
 0x16a   : > { %958 = vmatprep.subr.mxu1 %v1151_v0 }
 0x16b   : > { %959 = vmatpush3.msra.mxu1 %v597_v48 }
 0x16c   : > { %960 = vmatprep.subr.mxu1 %v1151_v0 }
 0x16d   : > { %961 = vmatpush3.msra.mxu1 %v596_v49 }
 0x16e   : > { %962 = vmatprep.subr.mxu1 %v1151_v0 }
 0x16f   : > { %963 = vmatpush3.msra.mxu1 %v595_v50 }
 0x224   : > { %v309_v10 = vpop.f32.mrf.mxu1 }
 0x225   : > { %v313_v11 = vsel %vm161_vm1, %v309_v10, -inf }
 0x226   : > { %314 = vmax.xlane.f32.xlu1 %v313_v11  ;;  %v940_v12 = vpop.f32.mrf.mxu1 }
 0x228   : > { %v479_v13 = vpop.f32.mrf.mxu1 }
 0x229   : > { %v483_v14 = vsel %vm161_vm1, %v479_v13, -inf }
 0x22a   : > { %484 = vmax.xlane.f32.xlu0 %v483_v14  ;;  %v950_v15 = vpop.f32.mrf.mxu1 }
 0x2af   : > { %v315_v16 = vpop.xlane.xlu1 %314 }
 0x2b0   : > { %v316_v17 = vsub.f32 %v309_v10, %v315_v16 }
 0x2b2   : > { %v317_v18 = vmul.f32 1.442695, %v316_v17 }
 0x2b3   : > { %v485_v19 = vpop.xlane.xlu0 %484 }
 0x2b4   : > { %1046 = vpow2.f32 %v317_v18  ;;  %v486_v20 = vsub.f32 %v479_v13, %v485_v19 }
 0x2b6   : > { %v487_v21 = vmul.f32 1.442695, %v486_v20 }
 0x2b8   : > { %1048 = vpow2.f32 %v487_v21 }
 0x2c1   : > { %v1047_v22 = vpop.eup %1046 }
 0x2c2   : > { %v319_v23 = vsel %vm161_vm1, %v1047_v22, 0.0 }
 0x2c3   : > { %320 = vadd.xlane.f32.xlu0 %v319_v23 }
 0x2c5   : > { %v1049_v24 = vpop.eup %1048 }
 0x2c6   : > { %v489_v25 = vsel %vm161_vm1, %v1049_v24, 0.0 }
 0x2c7   : > { %490 = vadd.xlane.f32.xlu1 %v489_v25 }
 0x2d8   : > { %494 = vrot.lane.b32.xlu1 %v232_v5, %s1156_s14 }
 0x2d9   : > { %324 = vrot.lane.b32.xlu0 %v232_v5, %s1157_s16 }
 0x34c   : > { %v321_v26 = vpop.xlane.xlu0 %320 }
 0x34d   : > { %1050 = vrcp.f32 %v321_v26 }
 0x350   : > { %v491_v27 = vpop.xlane.xlu1 %490  ;;  %v325_v28 = vpop.permute.xlu0 %324 }
 0x351   : > { %1052 = vrcp.f32 %v491_v27  ;;  %942 = vmatpush3.msra.mxu0 %v325_v28 }
 0x352   : > { %951 = vmatprep.subr.mxu0 %v1151_v0 }
 0x354   : > { %v495_v31 = vpop.permute.xlu1 %494 }
 0x35a   : > { %v1051_v29 = vpop.eup %1050 }
 0x35b   : > { %v323_v30 = vmul.f32 %v1051_v29, %v1047_v22 }
 0x35d   : > { %944 = vmatmul.mubr.msk.f32.vlgmr.msra.gmra.mxu0 %vm161_vm1, %v323_v30 }
 0x35e   : > { %v1053_v32 = vpop.eup %1052  ;;  %952 = vmatpush3.msra.mxu0 %v495_v31  ;;  %953 = vmatprep.mubr.msk.f32.mxu0 %vm1152_vm0, %v1151_v0 }
 0x35f   : > { %v493_v33 = vmul.f32 %v1053_v32, %v1049_v24  ;;  %967 = vmatprep.subr.mxu0 %v1151_v0 }
 0x361   : > { %954 = vmatmul.mubr.msk.f32.vlgmr.msra.gmra.mxu0 %vm161_vm1, %v493_v33 }
 0x362   : > { %983 = vmatprep.mubr.msk.f32.mxu0 %vm1152_vm0, %v1151_v0 }
 0x41d   : > { %v396_v35 = vpop.f32.mrf.mxu0 }
 0x41e   : > { %v404_v37 = vadd.f32 %v896_v34, %v396_v35 }
 0x41f   : > { %v945_v36 = vpop.f32.mrf.mxu0 }
 0x421   : > { %v566_v38 = vpop.f32.mrf.mxu0 }
 0x422   : > { %v1283_v39 = vadd.f32 %v566_v38, %v404_v37 }
 0x423   : > { %v955_v40 = vpop.f32.mrf.mxu0 }
 0x424   : > { %v572_v41 = vsel %vm571_vm2, %v1283_v39, 0.0 }
 0x425   : > { %573 = vadd.xlane.f32.xlu1 %v572_v41 }
 0x436   : > { %591 = vrot.lane.b32.xlu1 %v896_v34, %s1156_s14 }
 0x43a   : > { %708 = vrot.lane.b32.xlu1 %v685_v51, %s1158_s17 }
 0x43e   : > { %704 = vrot.lane.b32.xlu1 %v683_v53, %s1158_s17 }
 0x442   : > { %700 = vrot.lane.b32.xlu1 %v597_v48, %s1158_s17 }
 0x446   : > { %696 = vrot.lane.b32.xlu1 %v595_v50, %s1158_s17 }
 0x44a   : > { %719 = vrot.lane.b32.xlu1 %v900_v54, %s1156_s14 }
 0x4ae   : > { %v574_v42 = vpop.xlane.xlu1 %573 }
 0x4af   : > { %v576_v43 = vmul.f32 0.03125, %v574_v42 }
 0x4b1   : > { %v577_v44 = vsub.f32 %v1283_v39, %v576_v43 }
 0x4b2   : > { %v592_v59 = vpop.permute.xlu1 %591 }
 0x4b3   : > { %v578_v45 = vmul.f32 %v577_v44, %v577_v44 }
 0x4b5   : > { %v579_v46 = vsel %vm571_vm2, %v578_v45, 0.0 }
 0x4b6   : > { %580 = vadd.xlane.f32.xlu0 %v579_v46  ;;  %v709_v60 = vpop.permute.xlu1 %708 }
 0x4b7   : > { %968 = vmatpush3.msra.mxu0 %v709_v60 }
 0x4b8   : > { %969 = vmatprep.subr.mxu0 %v1151_v0 }
 0x4ba   : > { %v705_v62 = vpop.permute.xlu1 %704 }
 0x4be   : > { %v701_v3 = vpop.permute.xlu1 %700 }
 0x4c2   : > { %v697_v7 = vpop.permute.xlu1 %696 }
 0x4c6   : > { %v720_v13 = vpop.permute.xlu1 %719 }
 0x4cc   : > { %587 = vrot.lane.b32.xlu0 %v896_v34, %s1157_s16 }
 0x4d0   : > { %706 = vrot.lane.b32.xlu0 %v684_v52, %s1158_s17 }
 0x4d4   : > { %702 = vrot.lane.b32.xlu0 %v598_v47, %s1158_s17 }
 0x4d8   : > { %698 = vrot.lane.b32.xlu0 %v596_v49, %s1158_s17 }
 0x4dc   : > { %694 = vrot.lane.b32.xlu0 %v1252_v1, %s1158_s17 }
 0x53f   : > { %v581_v55 = vpop.xlane.xlu0 %580 }
 0x540   : > { %v582_v56 = vmul.f32 0.03125, %v581_v55 }
 0x542   : > { %v583_v57 = vadd.f32 1e-05, %v582_v56 }
 0x543   : > { %v588_v58 = vpop.permute.xlu0 %587 }
 0x544   : > { %1054 = vrsqrt.f32 %v583_v57 }
 0x547   : > { %v707_v61 = vpop.permute.xlu0 %706 }
 0x548   : > { %970 = vmatpush3.msra.mxu0 %v707_v61 }
 0x549   : > { %971 = vmatprep.subr.mxu0 %v1151_v0 }
 0x54a   : > { %972 = vmatpush3.msra.mxu0 %v705_v62 }
 0x54b   : > { %v703_v63 = vpop.permute.xlu0 %702  ;;  %973 = vmatprep.subr.mxu0 %v1151_v0 }
 0x54c   : > { %974 = vmatpush3.msra.mxu0 %v703_v63 }
 0x54d   : > { %975 = vmatprep.subr.mxu0 %v1151_v0 }
 0x54e   : > { %976 = vmatpush3.msra.mxu0 %v701_v3 }
 0x54f   : > { %v699_v4 = vpop.permute.xlu0 %698  ;;  %977 = vmatprep.subr.mxu0 %v1151_v0 }
 0x550   : > { %978 = vmatpush3.msra.mxu0 %v699_v4 }
 0x551   : > { %v1055_v1 = vpop.eup %1054  ;;  %979 = vmatprep.subr.mxu0 %v1151_v0 }
 0x552   : > { %v585_v2 = vmul.f32 %v1055_v1, %v577_v44  ;;  %980 = vmatpush3.msra.mxu0 %v697_v7 }
 0x553   : > { %v695_v8 = vpop.permute.xlu0 %694  ;;  %981 = vmatprep.subr.mxu0 %v1151_v0 }
 0x554   : > { %v590_v5 = vmul.f32 %v588_v58, %v585_v2  ;;  %982 = vmatpush3.msra.mxu0 %v695_v8 }
 0x556   : > { %v594_v6 = vadd.f32 %v592_v59, %v590_v5 }
 0x558   : > { %965 = vmatmul.mubr.msk.f32.vlgmr.msra.gmra.mxu1 %vm571_vm2, %v594_v6 }
 0x618   : > { %v673_v9 = vpop.f32.mrf.mxu1 }
 0x619   : > { %v674_v10 = vadd.f32 %v900_v54, %v673_v9 }
 0x61a   : > { %v966_v11 = vpop.f32.mrf.mxu1 }
 0x61b   : > { %v677_v12 = vmax.f32 %v674_v10, 0.0 }
 0x61d   : > { %984 = vmatmul.mubr.msk.f32.vlgmr.msra.gmra.mxu0 %vm722_vm3, %v677_v12 }
 0x6dd   : > { %v792_v14 = vpop.f32.mrf.mxu0 }
 0x6de   : > { %v793_v15 = vadd.f32 %v792_v14, %v720_v13 }
 0x6df   : > { %v985_v16 = vpop.f32.mrf.mxu0 }
 0x6e0   : > { %v796_v17 = vadd.f32 %v793_v15, %v1283_v39 }
 0x6e2   : > { %797 = vst.msk [vmem:[%s149_s24] sm:$0xff] %vm571_vm2, %v796_v17 }
 0x6e3   : > { %1095 = shalt.err (!%p1092_p0)
}
 0x6e4   : > { %s1096_s5 = scalar_lea.hbm %s810_s28, 128  ;;  %s1100_s8 = scalar_lea.hbm %s1342_s2, 256 }
 0x6e5   : > { %p1097_p1 = scmp.ne.s32.totalorder %s810_s28, %s1096_s5  ;;  %p1101_p4 = scmp.lt.s32.totalorder %s810_s28, %s1342_s2 }
 0x6e6   : > { %p1102_p7 = scmp.lt.s32.totalorder %s1100_s8, %s1096_s5 }
 0x6e7   : > { %p1098_p2 = pnand %p1097_p1, %p1213_p5 }
 0x6e8   : > { %p1103_p8 = por %p1102_p7, %p1101_p4 }
 0x6e9   : > { %p1099_p3 = pneg %p1098_p2 }
 0x6eb   : > { %p1104_p6 = pnand %p1103_p8, %p1099_p3 }
 0x6ed   : > { %1107 = shalt.err (!%p1104_p6)
}
 0x6ee   : > { %990 = dma.vmem_to_hbm [thread:$0]  (%p1213_p5), %s813_s25, 128, %s810_s28, %s799_s29  }
 0x6ef PF: > { %p1002_p9 = scmp.ge.s32.totalorder %s1146_s12, 2  ;;  %s824_s17 = sand.u32 1, %s1134_s9  }
 0x6f0   : > { %p1346_p10 = scmp.ne.s32.totalorder %s1344_s20, 0  ;;  %s825_s21 = scalar_lea.sflag [#allocation4], %s824_s17 }
 0x6f2   : > { %p997_p11 = pnand %p1002_p9, %p1346_p10 }
 0x6f4   : > { %p998_p12 = pneg %p997_p11 }
 0x6f6   : > { %1129 = dma.done.wait (%p998_p12), %s825_s21, 128  }
 0x6f7   : > { %1131 = vsyncadd (%p998_p12), %s825_s21, 4294967168  ;;  %p13_p13 = scmp.ge.s32.totalorder %s1200_s15, 4   ;;  %s1347_s9 = smov %s1138_s10 }
 0x6f8   : > { %s1348_s10 = smov %s1142_s11  ;;  %s1349_s11 = smov %s1211_s18 }
 0x6f9   : > { %s1350_s12 = smov %s1200_s15  ;;  %15 = sbr.rel (!%p13_p13) target bundleno = 4 (0x4), region = 68 }
 0x6fe   :  { %830 = vsyncpa [#allocation3], 1 }
 0x6ff   :  { %832 = vsyncpa [#allocation3 + $0x1], 1 }
 0x700   :  { %833 = vsyncpa [#allocation4], 1 }
 0x701   :  { %835 = vsyncpa [#allocation4 + $0x1], 1 }

</bundles_post_ra>
